<compile_context>
chip_gen: v6e
topology: v6e:2x2x1
jax: 0.10.0
libtpu: 0.0.40
codegen_flags: <defaults>
</compile_context>

<pallas_src>
import functools

import jax
import jax.numpy as jnp
from jax.experimental import pallas as pl
from jax.experimental.pallas import tpu as pltpu


# ---------------------------------------------------------------------------
# Kernels (one row-tile per grid step; weights stay resident in VMEM)
# ---------------------------------------------------------------------------
def _mlp_pred_kernel(x_ref, w1_ref, b1_ref, w2_ref, b2_ref, w3_ref, b3_ref,
                     out_ref):
    # lin1 + relu : (TM, C) @ (C, 64) -> f32 accumulate
    h1 = jnp.dot(x_ref[...], w1_ref[...], preferred_element_type=jnp.float32)
    h1 = jnp.maximum(h1 + b1_ref[...], 0.0)
    # lin2 + relu : cast hidden to bf16 for the MXU, accumulate in f32
    h2 = jnp.dot(h1.astype(w2_ref.dtype), w2_ref[...],
                 preferred_element_type=jnp.float32)
    h2 = jnp.maximum(h2 + b2_ref[...], 0.0)
    # lin3 (32 -> 1): VPU multiply + lane reduction (avoids a wasted 1-column
    # MXU pass).  w3_ref is the single output row stored as (1, 32) f32.
    y = jnp.sum(h2 * w3_ref[...], axis=-1, keepdims=True) + b3_ref[...]
    out_ref[...] = y.astype(out_ref.dtype)


def _mlp_ae_kernel(x_ref, w1_ref, b1_ref, w2_ref, b2_ref, out_ref):
    # lin1 + relu
    h1 = jnp.dot(x_ref[...], w1_ref[...], preferred_element_type=jnp.float32)
    h1 = jnp.maximum(h1 + b1_ref[...], 0.0)
    # lin2 (no activation)
    h2 = jnp.dot(h1.astype(w2_ref.dtype), w2_ref[...],
                 preferred_element_type=jnp.float32)
    out_ref[...] = (h2 + b2_ref[...]).astype(out_ref.dtype)


# ---------------------------------------------------------------------------
# Pure-JAX math (mirrors the kernel numerics; used for small-N dispatch and
# as the correctness reference)
# ---------------------------------------------------------------------------
def _prediction_math(x, w1, b1, w2, b2, w3, b3, compute_dtype):
    xc = x.astype(compute_dtype)
    h1 = jnp.maximum(
        jnp.dot(xc, w1.astype(compute_dtype),
                preferred_element_type=jnp.float32) + b1.astype(jnp.float32),
        0.0)
    h2 = jnp.maximum(
        jnp.dot(h1.astype(compute_dtype), w2.astype(compute_dtype),
                preferred_element_type=jnp.float32) + b2.astype(jnp.float32),
        0.0)
    y = jnp.dot(h2, w3.astype(jnp.float32),
                preferred_element_type=jnp.float32) + b3.astype(jnp.float32)
    return y.astype(x.dtype)


def _autoencoder_math(x, w1, b1, w2, b2, compute_dtype):
    xc = x.astype(compute_dtype)
    h1 = jnp.maximum(
        jnp.dot(xc, w1.astype(compute_dtype),
                preferred_element_type=jnp.float32) + b1.astype(jnp.float32),
        0.0)
    h2 = jnp.dot(h1.astype(compute_dtype), w2.astype(compute_dtype),
                 preferred_element_type=jnp.float32) + b2.astype(jnp.float32)
    return h2.astype(x.dtype)


# ---------------------------------------------------------------------------
# Pallas paths (row-tiled grid, VMEM-resident weights, bf16 traffic)
# ---------------------------------------------------------------------------
def _prediction_pallas(x, w1, b1, w2, b2, w3, b3, compute_dtype, block_rows):
    n, c = x.shape
    h1_dim = w1.shape[1]              # 64
    h2_dim = w2.shape[1]              # 32
    out_dtype = x.dtype

    xc = x.astype(compute_dtype)
    w1c = w1.astype(compute_dtype)
    w2c = w2.astype(compute_dtype)
    b1f = b1.astype(jnp.float32).reshape(1, h1_dim)
    b2f = b2.astype(jnp.float32).reshape(1, h2_dim)
    w3f = w3.astype(jnp.float32).reshape(1, h2_dim)   # (32,1) -> (1,32) row
    b3f = b3.astype(jnp.float32).reshape(1, 1)

    tm = block_rows
    grid = (pl.cdiv(n, tm),)          # ragged last tile handled by Pallas

    return pl.pallas_call(
        _mlp_pred_kernel,
        grid=grid,
        in_specs=[
            pl.BlockSpec((tm, c), lambda i: (i, 0)),          # x: row tiles
            pl.BlockSpec((c, h1_dim), lambda i: (0, 0)),      # weights/biases:
            pl.BlockSpec((1, h1_dim), lambda i: (0, 0)),      # constant block ->
            pl.BlockSpec((h1_dim, h2_dim), lambda i: (0, 0)), # VMEM-resident
            pl.BlockSpec((1, h2_dim), lambda i: (0, 0)),
            pl.BlockSpec((1, h2_dim), lambda i: (0, 0)),
            pl.BlockSpec((1, 1), lambda i: (0, 0)),
        ],
        out_specs=pl.BlockSpec((tm, 1), lambda i: (i, 0)),
        out_shape=jax.ShapeDtypeStruct((n, 1), out_dtype),
        compiler_params=pltpu.CompilerParams(
            dimension_semantics=("parallel",)),
    )(xc, w1c, b1f, w2c, b2f, w3f, b3f)


def _autoencoder_pallas(x, w1, b1, w2, b2, compute_dtype, block_rows):
    n, c = x.shape
    h_dim = w1.shape[1]               # 64
    out_dtype = x.dtype

    xc = x.astype(compute_dtype)
    w1c = w1.astype(compute_dtype)
    w2c = w2.astype(compute_dtype)
    b1f = b1.astype(jnp.float32).reshape(1, h_dim)
    b2f = b2.astype(jnp.float32).reshape(1, c)

    tm = block_rows
    grid = (pl.cdiv(n, tm),)

    return pl.pallas_call(
        _mlp_ae_kernel,
        grid=grid,
        in_specs=[
            pl.BlockSpec((tm, c), lambda i: (i, 0)),
            pl.BlockSpec((c, h_dim), lambda i: (0, 0)),
            pl.BlockSpec((1, h_dim), lambda i: (0, 0)),
            pl.BlockSpec((h_dim, c), lambda i: (0, 0)),
            pl.BlockSpec((1, c), lambda i: (0, 0)),
        ],
        out_specs=pl.BlockSpec((tm, c), lambda i: (i, 0)),
        out_shape=jax.ShapeDtypeStruct((n, c), out_dtype),
        compiler_params=pltpu.CompilerParams(
            dimension_semantics=("parallel",)),
    )(xc, w1c, b1f, w2c, b2f)


# ---------------------------------------------------------------------------
# Public wrappers: gate on problem size (Pallas only pays off when reading x
# from HBM is the bottleneck; at tiny N it is pure launch overhead).
# ---------------------------------------------------------------------------
@functools.partial(
    jax.jit,
    static_argnames=("block_rows", "compute_dtype", "min_rows_for_pallas"))
def ae_mlp_prediction(x, w1, b1, w2, b2, w3, b3, *, block_rows=512,
                      compute_dtype=jnp.bfloat16, min_rows_for_pallas=2048):
    if x.shape[0] < min_rows_for_pallas:
        return _prediction_math(x, w1, b1, w2, b2, w3, b3, compute_dtype)
    return _prediction_pallas(x, w1, b1, w2, b2, w3, b3, compute_dtype,
                              block_rows)


@functools.partial(
    jax.jit,
    static_argnames=("block_rows", "compute_dtype", "min_rows_for_pallas"))
def ae_mlp_autoencoder(x, w1, b1, w2, b2, *, block_rows=512,
                       compute_dtype=jnp.bfloat16, min_rows_for_pallas=2048):
    if x.shape[0] < min_rows_for_pallas:
        return _autoencoder_math(x, w1, b1, w2, b2, compute_dtype)
    return _autoencoder_pallas(x, w1, b1, w2, b2, compute_dtype, block_rows)


# ---------------------------------------------------------------------------
# Deterministic parameter init (mimics torch.nn.Linear: U(-1/sqrt(fan_in), ..))
# Weights returned already transposed to (in, out); biases as (1, out).
# ---------------------------------------------------------------------------
def init_linear(key, in_features, out_features, dtype=jnp.float32):
    kw, kb = jax.random.split(key)
    bound = 1.0 / jnp.sqrt(jnp.asarray(in_features, dtype))
    w = jax.random.uniform(kw, (in_features, out_features), dtype,
                           minval=-bound, maxval=bound)
    b = jax.random.uniform(kb, (1, out_features), dtype,
                           minval=-bound, maxval=bound)
    return w, b


# ---------------------------------------------------------------------------
if __name__ == "__main__":
    key = jax.random.PRNGKey(0)
    k_x, k1, k2, k3, k4, k5 = jax.random.split(key, 6)

    # Small demo shapes.  N is deliberately NOT a multiple of the row tile so
    # the ragged last tile path is exercised (3 grid steps at block_rows=128).
    N = 300
    IN_CHANNELS = 32
    TM = 128

    x = jax.random.normal(k_x, (N, IN_CHANNELS), jnp.float32)

    # ---- opts.problem == 'Prediction' : in -> 64 -> 32 -> 1 ----
    w1, b1 = init_linear(k1, IN_CHANNELS, 64)
    w2, b2 = init_linear(k2, 64, 32)
    w3, b3 = init_linear(k3, 32, 1)

    out_pred = ae_mlp_prediction(x, w1, b1, w2, b2, w3, b3,
                                 block_rows=TM, min_rows_for_pallas=0)
    out_pred = jax.block_until_ready(out_pred)
    ref_pred = _prediction_math(x, w1, b1, w2, b2, w3, b3, jnp.bfloat16)
    assert out_pred.shape == (N, 1)
    assert bool(jnp.allclose(out_pred, ref_pred, atol=5e-3, rtol=5e-3)), (
        "prediction mismatch, max abs err = "
        f"{float(jnp.max(jnp.abs(out_pred - ref_pred)))}")

    # ---- otherwise (autoencoder) : in -> 64 -> in ----
    aw1, ab1 = init_linear(k4, IN_CHANNELS, 64)
    aw2, ab2 = init_linear(k5, 64, IN_CHANNELS)

    out_ae = ae_mlp_autoencoder(x, aw1, ab1, aw2, ab2,
                                block_rows=TM, min_rows_for_pallas=0)
    out_ae = jax.block_until_ready(out_ae)
    ref_ae = _autoencoder_math(x, aw1, ab1, aw2, ab2, jnp.bfloat16)
    assert out_ae.shape == (N, IN_CHANNELS)
    assert bool(jnp.allclose(out_ae, ref_ae, atol=5e-3, rtol=5e-3)), (
        "autoencoder mismatch, max abs err = "
        f"{float(jnp.max(jnp.abs(out_ae - ref_ae)))}")

    # ---- small-N gated path: falls back to fused pure-JAX (no Pallas) ----
    small = ae_mlp_prediction(x[:8], w1, b1, w2, b2, w3, b3)
    small = jax.block_until_ready(small)
    assert small.shape == (8, 1)
    assert bool(jnp.all(jnp.isfinite(small)))

    print("KERNEL_OK")
</pallas_src>

<mosaic_0001>
module attributes {stable_mosaic.version = 11 : i64} {
  func.func @_mlp_pred_kernel(%arg0: i32, %arg1: memref<128x32xbf16, #tpu.memory_space<vmem>>, %arg2: memref<32x64xbf16, #tpu.memory_space<vmem>>, %arg3: memref<1x64xf32, #tpu.memory_space<vmem>>, %arg4: memref<64x32xbf16, #tpu.memory_space<vmem>>, %arg5: memref<1x32xf32, #tpu.memory_space<vmem>>, %arg6: memref<1x32xf32, #tpu.memory_space<vmem>>, %arg7: memref<1x1xf32, #tpu.memory_space<vmem>>, %arg8: memref<128x1xf32, #tpu.memory_space<vmem>>) attributes {dimension_semantics = [#tpu.dimension_semantics<parallel>], iteration_bounds = array<i64: 3>, scalar_prefetch = 0 : i64, scratch_operands = 0 : i64, tpu.core_type = #tpu.core_type<tc>, window_params = [{transform_indices = @transform_0, window_bounds = array<i64: 128, 32>}, {pipeline_mode = #tpu.pipeline_mode<synchronous>, transform_indices = @transform_1, window_bounds = array<i64: 32, 64>}, {pipeline_mode = #tpu.pipeline_mode<synchronous>, transform_indices = @transform_2, window_bounds = array<i64: 1, 64>}, {pipeline_mode = #tpu.pipeline_mode<synchronous>, transform_indices = @transform_3, window_bounds = array<i64: 64, 32>}, {pipeline_mode = #tpu.pipeline_mode<synchronous>, transform_indices = @transform_4, window_bounds = array<i64: 1, 32>}, {pipeline_mode = #tpu.pipeline_mode<synchronous>, transform_indices = @transform_5, window_bounds = array<i64: 1, 32>}, {pipeline_mode = #tpu.pipeline_mode<synchronous>, transform_indices = @transform_6, window_bounds = array<i64: 1, 1>}, {transform_indices = @transform_7, window_bounds = array<i64: 128, 1>}]} {
    %c0 = arith.constant 0 : index
    %c0_0 = arith.constant 0 : index
    %0 = vector.load %arg1[%c0, %c0_0] : memref<128x32xbf16, #tpu.memory_space<vmem>>, vector<128x32xbf16>
    %c0_1 = arith.constant 0 : index
    %c0_2 = arith.constant 0 : index
    %1 = vector.load %arg2[%c0_1, %c0_2] : memref<32x64xbf16, #tpu.memory_space<vmem>>, vector<32x64xbf16>
    %cst = arith.constant dense<0.000000e+00> : vector<128x64xf32>
    %2 = tpu.matmul %0, %1, %cst {dimension_numbers = #tpu.dot_dimension_numbers<[1], [0], [0], [1], [0, 0, 1, 1], [], []>} : vector<128x32xbf16>, vector<32x64xbf16>, vector<128x64xf32> -> vector<128x64xf32>
    %c0_3 = arith.constant 0 : index
    %c0_4 = arith.constant 0 : index
    %3 = vector.load %arg3[%c0_3, %c0_4] : memref<1x64xf32, #tpu.memory_space<vmem>>, vector<1x64xf32>
    %4 = vector.broadcast %3 : vector<1x64xf32> to vector<128x64xf32>
    %5 = arith.addf %2, %4 : vector<128x64xf32>
    %cst_5 = arith.constant 0.000000e+00 : f32
    %6 = vector.broadcast %cst_5 : f32 to vector<128x64xf32>
    %7 = arith.maximumf %5, %6 : vector<128x64xf32>
    %8 = arith.truncf %7 : vector<128x64xf32> to vector<128x64xbf16>
    %c0_6 = arith.constant 0 : index
    %c0_7 = arith.constant 0 : index
    %9 = vector.load %arg4[%c0_6, %c0_7] : memref<64x32xbf16, #tpu.memory_space<vmem>>, vector<64x32xbf16>
    %cst_8 = arith.constant dense<0.000000e+00> : vector<128x32xf32>
    %10 = tpu.matmul %8, %9, %cst_8 {dimension_numbers = #tpu.dot_dimension_numbers<[1], [0], [0], [1], [0, 0, 1, 1], [], []>} : vector<128x64xbf16>, vector<64x32xbf16>, vector<128x32xf32> -> vector<128x32xf32>
    %c0_9 = arith.constant 0 : index
    %c0_10 = arith.constant 0 : index
    %11 = vector.load %arg5[%c0_9, %c0_10] : memref<1x32xf32, #tpu.memory_space<vmem>>, vector<1x32xf32>
    %12 = vector.broadcast %11 : vector<1x32xf32> to vector<128x32xf32>
    %13 = arith.addf %10, %12 : vector<128x32xf32>
    %cst_11 = arith.constant 0.000000e+00 : f32
    %14 = vector.broadcast %cst_11 : f32 to vector<128x32xf32>
    %15 = arith.maximumf %13, %14 : vector<128x32xf32>
    %c0_12 = arith.constant 0 : index
    %c0_13 = arith.constant 0 : index
    %16 = vector.load %arg6[%c0_12, %c0_13] : memref<1x32xf32, #tpu.memory_space<vmem>>, vector<1x32xf32>
    %17 = vector.broadcast %16 : vector<1x32xf32> to vector<128x32xf32>
    %18 = arith.mulf %15, %17 : vector<128x32xf32>
    %cst_14 = arith.constant dense<0.000000e+00> : vector<128xf32>
    %19 = vector.multi_reduction <add>, %18, %cst_14 [1] : vector<128x32xf32> to vector<128xf32>
    %20 = vector.shape_cast %19 : vector<128xf32> to vector<128x1xf32>
    %c0_15 = arith.constant 0 : index
    %c0_16 = arith.constant 0 : index
    %21 = vector.load %arg7[%c0_15, %c0_16] : memref<1x1xf32, #tpu.memory_space<vmem>>, vector<1x1xf32>
    %22 = vector.broadcast %21 : vector<1x1xf32> to vector<128x1xf32>
    %23 = arith.addf %20, %22 : vector<128x1xf32>
    %c0_17 = arith.constant 0 : index
    %c0_18 = arith.constant 0 : index
    %24 = vector.load %arg8[%c0_17, %c0_18] : memref<128x1xf32, #tpu.memory_space<vmem>>, vector<128x1xf32>
    tpu.vector_store %arg8[%c0_17, %c0_18], %23 {strides = array<i32>} : memref<128x1xf32, #tpu.memory_space<vmem>>, vector<128x1xf32>,
    return
  }
  func.func @transform_0(%arg0: i32) -> (i32, i32) {
    %c0_i32 = arith.constant 0 : i32
    %c0_i32_0 = arith.constant 0 : i32
    return %arg0, %c0_i32 : i32, i32
  }
  func.func @transform_1(%arg0: i32) -> (i32, i32) {
    %c0_i32 = arith.constant 0 : i32
    %c0_i32_0 = arith.constant 0 : i32
    %c0_i32_1 = arith.constant 0 : i32
    return %c0_i32, %c0_i32_0 : i32, i32
  }
  func.func @transform_2(%arg0: i32) -> (i32, i32) {
    %c0_i32 = arith.constant 0 : i32
    %c0_i32_0 = arith.constant 0 : i32
    %c0_i32_1 = arith.constant 0 : i32
    return %c0_i32, %c0_i32_0 : i32, i32
  }
  func.func @transform_3(%arg0: i32) -> (i32, i32) {
    %c0_i32 = arith.constant 0 : i32
    %c0_i32_0 = arith.constant 0 : i32
    %c0_i32_1 = arith.constant 0 : i32
    return %c0_i32, %c0_i32_0 : i32, i32
  }
  func.func @transform_4(%arg0: i32) -> (i32, i32) {
    %c0_i32 = arith.constant 0 : i32
    %c0_i32_0 = arith.constant 0 : i32
    %c0_i32_1 = arith.constant 0 : i32
    return %c0_i32, %c0_i32_0 : i32, i32
  }
  func.func @transform_5(%arg0: i32) -> (i32, i32) {
    %c0_i32 = arith.constant 0 : i32
    %c0_i32_0 = arith.constant 0 : i32
    %c0_i32_1 = arith.constant 0 : i32
    return %c0_i32, %c0_i32_0 : i32, i32
  }
  func.func @transform_6(%arg0: i32) -> (i32, i32) {
    %c0_i32 = arith.constant 0 : i32
    %c0_i32_0 = arith.constant 0 : i32
    %c0_i32_1 = arith.constant 0 : i32
    return %c0_i32, %c0_i32_0 : i32, i32
  }
  func.func @transform_7(%arg0: i32) -> (i32, i32) {
    %c0_i32 = arith.constant 0 : i32
    %c0_i32_0 = arith.constant 0 : i32
    return %arg0, %c0_i32 : i32, i32
  }
}

</mosaic_0001>

<bundles_post_ra>
// kernel: ae_mlp_prediction.1
= control target key start
LH: loop header
LB: loop body
LE: loop exit
PB: predicated region body
PF: predicated region fallthrough
CT: control target
= control target key end

     0   :  { %s1719_s0 = inlined_call_operand.vmem [shape: bf16[300,32], index: 0, kind: input, shape index: {}]   ;;  %s1720_s1 = inlined_call_operand.vmem [shape: bf16[32,64], index: 1, kind: input, shape index: {}]   ;;  %s1721_s2 = inlined_call_operand.vmem [shape: f32[1,64], index: 2, kind: input, shape index: {}]   ;;  %s1722_s3 = inlined_call_operand.vmem [shape: bf16[64,32], index: 3, kind: input, shape index: {}]   ;;  %s1723_s4 = inlined_call_operand.vmem [shape: f32[1,32], index: 4, kind: input, shape index: {}]   ;;  %s1724_s5 = inlined_call_operand.vmem [shape: f32[1,32], index: 5, kind: input, shape index: {}]   ;;  %s1725_s6 = inlined_call_operand.<no memory space> [shape: f32[1,1], index: 6, kind: input, shape index: {}]   ;;  %s1726_s7 = inlined_call_operand.vmem [shape: f32[300,1], index: 7, kind: output, shape index: {}]  }
   0x1   :  { %v12_v0 = vstv %s1725_s6 }
   0x2   :  { %13 = vst [vmem:[#allocation2] sm:$0x1] %v12_v0 }
   0x3   :  { %s1452_s26 = smov 0   ;;  %s1454_s27 = smov 0  }
   0x4   :  { %s1456_s28 = smov 0  }
   0x5 LB: > { %s1465_s6 = sadd.s32 4294967295, %s1375_s28   ;;  %s1467_s29 = sadd.s32 1, %s1375_s28   ;;  %s1375_s28 = sphi %s1456_s28, %s1733_s28   ;;  %s1371_s27 = sphi %s1454_s27, %s1732_s27   ;;  %s1367_s26 = sphi %s1452_s26, %s1731_s26  }
   0x6   : > { %s175_s30 = ssub.s32 %s1375_s28, %s1467_s29  ;;  %s178_s8 = sadd.s32 1, %s1371_s27 }
   0x7   : > { %p176_p0 = scmp.eq.s32.totalorder %s175_s30, 0  ;;  %p188_p1 = scmp.ne.s32.totalorder %s1371_s27, %s1367_s26 }
   0x8   : > { %p189_p2 = scmp.eq.s32.totalorder %s1465_s6, 2  ;;  %p1095_p3 = scmp.ge.s32.totalorder %s1375_s28, 1 }
   0x9   : > { %s1475_s9 = scalar_select %p176_p0, %s1371_s27, %s178_s8  }
   0xa   : > { %p1477_p4 = por %p189_p2, %p188_p1  ;;  %p248_p5 = scmp.lt.s32.totalorder %s1375_s28, 4 }
   0xc   : > { %p249_p6 = pnand %p1095_p3, %p248_p5 }
   0xd   : > { %s1485_s13 = sshll.u32 (!%p249_p6), %s1465_s6, 4 }
   0xe   : > { %252 = sbr.rel (%p249_p6) target bundleno = 650 (0x28a), region = 48  ;;  %p288_p7 = scmp.lt.s32.totalorder (!%p249_p6), %s1485_s13, 37 }
  0x13   : > { %v1307_v1 = vld [vmem:[%s1720_s1 + $0x8] sm:$0xff]   ;;  %v1308_v2 = vld [vmem:[%s1720_s1] sm:$0xff]   ;;  %v1317_v3 = vld [vmem:[%s1722_s3 + $0x18] sm:$0xff]   ;;  %s289_s18 = scalar_select %p288_p7, %s1485_s13, 37  ;;  %vm382_vm0 = vcmask 261120   ;;  %vm567_vm1 = vcmask 523264  }
  0x14   : > { %1175 = vmatprep.subr.bf16.mxu0 %v1307_v1  ;;  %1195 = vmatprep.subr.bf16.mxu1 %v1317_v3  ;;  %v1318_v12 = vld [vmem:[%s1722_s3 + $0x10] sm:$0xff]   ;;  %v1319_v13 = vld [vmem:[%s1722_s3 + $0x8] sm:$0xff]   ;;  %v1320_v14 = vld [vmem:[%s1722_s3] sm:$0xff]   ;;  %vm799_vm2 = vcmask 7168   ;;  %s1150_s21 = sshll.u32 (%p1477_p4), %s1465_s6, 7 }
  0x15   : > { %1176 = vmatpush3.bf16.msra.mxu0 %v1307_v1  ;;  %s1098_s19 = sshll.u32 %s289_s18, 2  ;;  %1196 = vmatpush3.bf16.msra.mxu1 %v1317_v3  ;;  %v1099_v17 = vld [vmem:[%s1721_s2] ss:$0 sm:$0xff]  ;;  %s280_s18 = sand.u32 1, %s1367_s26  }
  0x16   : > { %1177 = vmatprep.subr.bf16.mxu0 %v1308_v2  ;;  %s291_s22 = scalar_lea.vmem %s1719_s0, %s1098_s19  ;;  %1197 = vmatprep.subr.bf16.mxu1 %v1318_v12  ;;  %s1096_s19 = sshll.u32 %s280_s18, 7 }
  0x17   : > { %v1309_v4 = vld [vmem:[%s291_s22] sm:$0xff]   ;;  %v1310_v5 = vld [vmem:[%s291_s22 + $0x8] sm:$0xff]   ;;  %v1311_v6 = vld [vmem:[%s291_s22 + $0x10] sm:$0xff]   ;;  %s1585_s20 = scalar_lea.vmem [#allocation3], %s1096_s19   ;;  %s824_s26 = ssub.s32 (%p1477_p4), 38, %s1485_s13 }
  0x18   : > { %1179 = vmatprep.mubr.msk.bf16.mxu0 %vm382_vm0, %v1309_v4  ;;  %v1312_v7 = vld [vmem:[%s291_s22 + $0x18] sm:$0xff]   ;;  %v1313_v8 = vld [vmem:[%s291_s22 + $0x20] sm:$0xff]   ;;  %v1314_v9 = vld [vmem:[%s291_s22 + $0x28] sm:$0xff]   ;;  %p825_p8 = scmp.lt.s32.totalorder (%p1477_p4), %s824_s26, 16  ;;  %s1626_s24 = scalar_lea.vmem (%p1477_p4), %s1726_s7, %s1150_s21  }
  0x19   : > { %1178 = vmatpush3.bf16.msra.mxu0 %v1308_v2  ;;  %v1315_v10 = vld [vmem:[%s291_s22 + $0x30] sm:$0xff]   ;;  %v1316_v11 = vld [vmem:[%s291_s22 + $0x38] sm:$0xff]   ;;  %1198 = vmatpush3.bf16.msra.mxu1 %v1318_v12  ;;  %v1535_v12 = vld [vmem:[%s1724_s5] ss:$0 sm:$0xff] }
  0x1a   : > { %1199 = vmatprep.subr.bf16.mxu1 %v1319_v13 }
  0x1c   : > { %1180 = vmatmul.mubr.msk.bf16.vlgmr.msra.gmra.mxu0 %vm382_vm0, %v1310_v5 }
  0x1d   : > { %1183 = vmatprep.mubr.msk.bf16.mxu0 %vm382_vm0, %v1311_v6  ;;  %1200 = vmatpush3.bf16.msra.mxu1 %v1319_v13 }
  0x1e   : > { %1201 = vmatprep.subr.bf16.mxu1 %v1320_v14 }
  0x21   : > { %1202 = vmatpush3.bf16.msra.mxu1 %v1320_v14 }
  0x24   : > { %1184 = vmatmul.mubr.msk.bf16.gmra.mxu0 %vm382_vm0, %v1312_v7 }
  0x25   : > { %1187 = vmatprep.mubr.msk.bf16.mxu0 %vm382_vm0, %v1313_v8  ;;  %v1529_v8 = vld [vmem:[%s1723_s4] ss:$0 sm:$0xff] }
  0x2c   : > { %1188 = vmatmul.mubr.msk.bf16.gmra.mxu0 %vm382_vm0, %v1314_v9 }
  0x2d   : > { %1191 = vmatprep.mubr.msk.bf16.mxu0 %vm382_vm0, %v1315_v10 }
  0x34   : > { %1192 = vmatmul.mubr.msk.bf16.gmra.mxu0 %vm382_vm0, %v1316_v11 }
  0xdc   : > { %v1181_v15 = vpop.f32.mrf.mxu0 }
  0xdd   : > { %v450_v21 = vadd.f32 %v1181_v15, %v1099_v17 }
  0xde   : > { %v441_v16 = vpop.f32.mrf.mxu0 }
  0xdf   : > { %v442_v19 = vadd.f32 %v1099_v17, %v441_v16  ;;  %v506_v28 = vmax.f32 %v450_v21, 0.0 }
  0xe0   : > { %v1182_v18 = vpop.f32.mrf.mxu0 }
  0xe1   : > { %v453_v20 = vadd.f32 %v1182_v18, %v1099_v17  ;;  %v504_v26 = vmax.f32 %v442_v19, 0.0 }
  0xe2   : > { %v444_v22 = vpop.f32.mrf.mxu0 }
  0xe3   : > { %v445_v23 = vadd.f32 %v1099_v17, %v444_v22  ;;  %v507_v24 = vmax.f32 %v453_v20, 0.0 }
  0xe4   : > { %v1185_v25 = vpop.f32.mrf.mxu0 }
  0xe5   : > { %v505_v27 = vmax.f32 %v445_v23, 0.0  ;;  %v521_v31 = vpack.c.bf16 %v507_v24, %v506_v28  ;;  %v466_v35 = vadd.f32 %v1185_v25, %v1099_v17 }
  0xe6   : > { %v457_v29 = vpop.f32.mrf.mxu0 }
  0xe7   : > { %v520_v30 = vpack.c.bf16 %v505_v27, %v504_v26  ;;  %v458_v33 = vadd.f32 %v1099_v17, %v457_v29  ;;  %v510_v42 = vmax.f32 %v466_v35, 0.0 }
  0xe8   : > { %v1186_v32 = vpop.f32.mrf.mxu0 }
  0xe9   : > { %v469_v34 = vadd.f32 %v1186_v32, %v1099_v17  ;;  %1203 = vmatprep.mubr.msk.bf16.mxu1 %vm567_vm1, %v520_v30  ;;  %v508_v40 = vmax.f32 %v458_v33, 0.0 }
  0xea   : > { %v460_v36 = vpop.f32.mrf.mxu0  ;;  %1204 = vmatmul.mubr.msk.bf16.vlgmr.msra.gmra.mxu1 %vm567_vm1, %v521_v31 }
  0xeb   : > { %v461_v37 = vadd.f32 %v1099_v17, %v460_v36  ;;  %v511_v38 = vmax.f32 %v469_v34, 0.0 }
  0xec   : > { %v1189_v39 = vpop.f32.mrf.mxu0 }
  0xed   : > { %v509_v41 = vmax.f32 %v461_v37, 0.0  ;;  %v523_v45 = vpack.c.bf16 %v511_v38, %v510_v42  ;;  %v482_v49 = vadd.f32 %v1189_v39, %v1099_v17 }
  0xee   : > { %v473_v43 = vpop.f32.mrf.mxu0 }
  0xef   : > { %v522_v44 = vpack.c.bf16 %v509_v41, %v508_v40  ;;  %v474_v47 = vadd.f32 %v1099_v17, %v473_v43  ;;  %v514_v56 = vmax.f32 %v482_v49, 0.0 }
  0xf0   : > { %v1190_v46 = vpop.f32.mrf.mxu0 }
  0xf1   : > { %v485_v48 = vadd.f32 %v1190_v46, %v1099_v17  ;;  %1207 = vmatprep.mubr.msk.bf16.mxu1 %vm567_vm1, %v522_v44  ;;  %v512_v54 = vmax.f32 %v474_v47, 0.0 }
  0xf2   : > { %v476_v50 = vpop.f32.mrf.mxu0  ;;  %1208 = vmatmul.mubr.msk.bf16.gmra.mxu1 %vm567_vm1, %v523_v45 }
  0xf3   : > { %v477_v51 = vadd.f32 %v1099_v17, %v476_v50  ;;  %v515_v52 = vmax.f32 %v485_v48, 0.0 }
  0xf4   : > { %v1193_v53 = vpop.f32.mrf.mxu0 }
  0xf5   : > { %v513_v55 = vmax.f32 %v477_v51, 0.0  ;;  %v525_v59 = vpack.c.bf16 %v515_v52, %v514_v56  ;;  %v498_v63 = vadd.f32 %v1193_v53, %v1099_v17 }
  0xf6   : > { %v489_v57 = vpop.f32.mrf.mxu0 }
  0xf7   : > { %v524_v58 = vpack.c.bf16 %v513_v55, %v512_v54  ;;  %v490_v61 = vadd.f32 %v1099_v17, %v489_v57  ;;  %v518_v5 = vmax.f32 %v498_v63, 0.0 }
  0xf8   : > { %v1194_v60 = vpop.f32.mrf.mxu0 }
  0xf9   : > { %v501_v62 = vadd.f32 %v1194_v60, %v1099_v17  ;;  %1211 = vmatprep.mubr.msk.bf16.mxu1 %vm567_vm1, %v524_v58  ;;  %v516_v3 = vmax.f32 %v490_v61, 0.0 }
  0xfa   : > { %v492_v0 = vpop.f32.mrf.mxu0  ;;  %1212 = vmatmul.mubr.msk.bf16.gmra.mxu1 %vm567_vm1, %v525_v59 }
  0xfb   : > { %v493_v1 = vadd.f32 %v1099_v17, %v492_v0  ;;  %v519_v2 = vmax.f32 %v501_v62, 0.0 }
  0xfd   : > { %v517_v4 = vmax.f32 %v493_v1, 0.0  ;;  %v527_v7 = vpack.c.bf16 %v519_v2, %v518_v5 }
  0xff   : > { %v526_v6 = vpack.c.bf16 %v517_v4, %v516_v3 }
 0x101   : > { %1215 = vmatprep.mubr.msk.bf16.mxu1 %vm567_vm1, %v526_v6 }
 0x102   : > { %1216 = vmatmul.mubr.msk.bf16.gmra.mxu1 %vm567_vm1, %v527_v7 }
 0x1aa   : > { %v1205_v9 = vpop.f32.mrf.mxu1 }
 0x1ab   : > { %v635_v10 = vadd.f32 %v1205_v9, %v1529_v8 }
 0x1ac   : > { %v626_v11 = vpop.f32.mrf.mxu1 }
 0x1ad   : > { %v691_v13 = vmax.f32 %v635_v10, 0.0  ;;  %v627_v14 = vadd.f32 %v1529_v8, %v626_v11 }
 0x1ae   : > { %v1206_v15 = vpop.f32.mrf.mxu1 }
 0x1af   : > { %v689_v16 = vmax.f32 %v627_v14, 0.0  ;;  %v638_v17 = vadd.f32 %v1206_v15, %v1529_v8  ;;  %v714_v18 = vmul.f32 %v1535_v12, %v691_v13 }
 0x1b0   : > { %v629_v19 = vpop.f32.mrf.mxu1 }
 0x1b1   : > { %v692_v20 = vmax.f32 %v638_v17, 0.0  ;;  %v630_v21 = vadd.f32 %v1529_v8, %v629_v19  ;;  %v734_v22 = vsel %vm382_vm0, %v714_v18, 0.0  ;;  %v712_v23 = vmul.f32 %v1535_v12, %v689_v16 }
 0x1b2   : > { %735 = vadd.xlane.f32.xlu1 %v734_v22  ;;  %v1209_v24 = vpop.f32.mrf.mxu1 }
 0x1b3   : > { %v690_v25 = vmax.f32 %v630_v21, 0.0  ;;  %v651_v26 = vadd.f32 %v1209_v24, %v1529_v8  ;;  %v728_v27 = vsel %vm382_vm0, %v712_v23, 0.0  ;;  %v715_v28 = vmul.f32 %v1535_v12, %v692_v20 }
 0x1b4   : > { %v642_v29 = vpop.f32.mrf.mxu1  ;;  %729 = vadd.xlane.f32.xlu0 %v728_v27  ;;  %v1132_v27 = vld [vmem:[#allocation2] ss:$0 sm:$0xff] }
 0x1b5   : > { %v695_v30 = vmax.f32 %v651_v26, 0.0  ;;  %v643_v31 = vadd.f32 %v1529_v8, %v642_v29  ;;  %v737_v32 = vsel %vm382_vm0, %v715_v28, 0.0  ;;  %v713_v33 = vmul.f32 %v1535_v12, %v690_v25 }
 0x1b6   : > { %738 = vadd.xlane.f32.xlu1 %v737_v32  ;;  %v1210_v34 = vpop.f32.mrf.mxu1 }
 0x1b7   : > { %v693_v35 = vmax.f32 %v643_v31, 0.0  ;;  %v654_v36 = vadd.f32 %v1210_v34, %v1529_v8  ;;  %v731_v37 = vsel %vm382_vm0, %v713_v33, 0.0  ;;  %v718_v38 = vmul.f32 %v1535_v12, %v695_v30 }
 0x1b8   : > { %v645_v39 = vpop.f32.mrf.mxu1  ;;  %732 = vadd.xlane.f32.xlu0 %v731_v37 }
 0x1b9   : > { %v696_v40 = vmax.f32 %v654_v36, 0.0  ;;  %v646_v41 = vadd.f32 %v1529_v8, %v645_v39  ;;  %v746_v43 = vsel %vm382_vm0, %v718_v38, 0.0  ;;  %v716_v47 = vmul.f32 %v1535_v12, %v693_v35 }
 0x1ba   : > { %v1213_v42 = vpop.f32.mrf.mxu1 }
 0x1bb   : > { %v694_v44 = vmax.f32 %v646_v41, 0.0  ;;  %v667_v45 = vadd.f32 %v1213_v42, %v1529_v8  ;;  %v719_v46 = vmul.f32 %v1535_v12, %v696_v40  ;;  %v740_v56 = vsel %vm382_vm0, %v716_v47, 0.0 }
 0x1bc   : > { %v658_v48 = vpop.f32.mrf.mxu1  ;;  %747 = vadd.xlane.f32.xlu0 %v746_v43 }
 0x1bd   : > { %v699_v49 = vmax.f32 %v667_v45, 0.0  ;;  %v659_v50 = vadd.f32 %v1529_v8, %v658_v48  ;;  %v749_v51 = vsel %vm382_vm0, %v719_v46, 0.0  ;;  %v717_v52 = vmul.f32 %v1535_v12, %v694_v44 }
 0x1be   : > { %750 = vadd.xlane.f32.xlu1 %v749_v51  ;;  %v1214_v53 = vpop.f32.mrf.mxu1 }
 0x1bf   : > { %v697_v54 = vmax.f32 %v659_v50, 0.0  ;;  %v670_v55 = vadd.f32 %v1214_v53, %v1529_v8  ;;  %v722_v57 = vmul.f32 %v1535_v12, %v699_v49  ;;  %v743_v61 = vsel %vm382_vm0, %v717_v52, 0.0 }
 0x1c0   : > { %v661_v58 = vpop.f32.mrf.mxu1  ;;  %741 = vadd.xlane.f32.xlu0 %v740_v56 }
 0x1c1   : > { %v700_v59 = vmax.f32 %v670_v55, 0.0  ;;  %v662_v60 = vadd.f32 %v1529_v8, %v661_v58  ;;  %v758_v63 = vsel %vm382_vm0, %v722_v57, 0.0  ;;  %v720_v3 = vmul.f32 %v1535_v12, %v697_v54 }
 0x1c2   : > { %v1217_v62 = vpop.f32.mrf.mxu1  ;;  %744 = vadd.xlane.f32.xlu1 %v743_v61 }
 0x1c3   : > { %v698_v0 = vmax.f32 %v662_v60, 0.0  ;;  %v683_v1 = vadd.f32 %v1217_v62, %v1529_v8  ;;  %v723_v2 = vmul.f32 %v1535_v12, %v700_v59  ;;  %v752_v14 = vsel %vm382_vm0, %v720_v3, 0.0 }
 0x1c4   : > { %v674_v4 = vpop.f32.mrf.mxu1  ;;  %759 = vadd.xlane.f32.xlu0 %v758_v63 }
 0x1c5   : > { %v675_v5 = vadd.f32 %v1529_v8, %v674_v4  ;;  %v761_v6 = vsel %vm382_vm0, %v723_v2, 0.0  ;;  %v721_v7 = vmul.f32 %v1535_v12, %v698_v0  ;;  %v703_v10 = vmax.f32 %v683_v1, 0.0 }
 0x1c6   : > { %v1218_v9 = vpop.f32.mrf.mxu1  ;;  %762 = vadd.xlane.f32.xlu1 %v761_v6 }
 0x1c7   : > { %v701_v11 = vmax.f32 %v675_v5, 0.0  ;;  %v686_v13 = vadd.f32 %v1218_v9, %v1529_v8  ;;  %v755_v17 = vsel %vm382_vm0, %v721_v7, 0.0  ;;  %v726_v22 = vmul.f32 %v1535_v12, %v703_v10 }
 0x1c8   : > { %v677_v15 = vpop.f32.mrf.mxu1  ;;  %753 = vadd.xlane.f32.xlu0 %v752_v14 }
 0x1c9   : > { %v678_v16 = vadd.f32 %v1529_v8, %v677_v15  ;;  %v724_v18 = vmul.f32 %v1535_v12, %v701_v11  ;;  %v704_v19 = vmax.f32 %v686_v13, 0.0  ;;  %v770_v25 = vsel %vm382_vm0, %v726_v22, 0.0 }
 0x1ca   : > { %756 = vadd.xlane.f32.xlu1 %v755_v17 }
 0x1cb   : > { %v702_v20 = vmax.f32 %v678_v16, 0.0  ;;  %v764_v21 = vsel %vm382_vm0, %v724_v18, 0.0  ;;  %v727_v8 = vmul.f32 %v1535_v12, %v704_v19 }
 0x1cc   : > { %765 = vadd.xlane.f32.xlu0 %v764_v21 }
 0x1cd   : > { %v725_v23 = vmul.f32 %v1535_v12, %v702_v20  ;;  %v773_v26 = vsel %vm382_vm0, %v727_v8, 0.0 }
 0x1cf   : > { %v767_v24 = vsel %vm382_vm0, %v725_v23, 0.0 }
 0x1d0   : > { %768 = vadd.xlane.f32.xlu1 %v767_v24  ;;  %771 = vadd.xlane.f32.xlu0 %v770_v25 }
 0x1d4   : > { %774 = vadd.xlane.f32.xlu1 %v773_v26 }
 0x23b   : > { %v736_v28 = vpop.xlane.xlu1 %735 }
 0x23c   : > { %v785_v29 = vadd.f32 %v1132_v27, %v736_v28 }
 0x23d   : > { %v730_v30 = vpop.xlane.xlu0 %729 }
 0x23e   : > { %802 = vst.msk [vmem:[%s1585_s20 + $0x10] sm:$0xff] %vm799_vm2, %v785_v29  ;;  %v783_v12 = vadd.f32 %v1132_v27, %v730_v30 }
 0x23f   : > { %v739_v31 = vpop.xlane.xlu1 %738 }
 0x240   : > { %800 = vst.msk [vmem:[%s1585_s20] sm:$0xff] %vm799_vm2, %v783_v12  ;;  %v786_v32 = vadd.f32 %v1132_v27, %v739_v31 }
 0x241   : > { %v733_v33 = vpop.xlane.xlu0 %732 }
 0x242   : > { %803 = vst.msk [vmem:[%s1585_s20 + $0x18] sm:$0xff] %vm799_vm2, %v786_v32  ;;  %v784_v34 = vadd.f32 %v1132_v27, %v733_v33 }
 0x244   : > { %801 = vst.msk [vmem:[%s1585_s20 + $0x8] sm:$0xff] %vm799_vm2, %v784_v34 }
 0x245   : > { %v748_v35 = vpop.xlane.xlu0 %747 }
 0x246   : > { %v789_v36 = vadd.f32 %v1132_v27, %v748_v35 }
 0x247   : > { %v751_v37 = vpop.xlane.xlu1 %750 }
 0x248   : > { %806 = vst.msk [vmem:[%s1585_s20 + $0x30] sm:$0xff] %vm799_vm2, %v789_v36  ;;  %v790_v38 = vadd.f32 %v1132_v27, %v751_v37 }
 0x249   : > { %v742_v39 = vpop.xlane.xlu0 %741 }
 0x24a   : > { %807 = vst.msk [vmem:[%s1585_s20 + $0x38] sm:$0xff] %vm799_vm2, %v790_v38  ;;  %v787_v40 = vadd.f32 %v1132_v27, %v742_v39 }
 0x24b   : > { %v745_v41 = vpop.xlane.xlu1 %744 }
 0x24c   : > { %804 = vst.msk [vmem:[%s1585_s20 + $0x20] sm:$0xff] %vm799_vm2, %v787_v40  ;;  %v788_v42 = vadd.f32 %v1132_v27, %v745_v41 }
 0x24d   : > { %v760_v43 = vpop.xlane.xlu0 %759 }
 0x24e   : > { %805 = vst.msk [vmem:[%s1585_s20 + $0x28] sm:$0xff] %vm799_vm2, %v788_v42  ;;  %v793_v44 = vadd.f32 %v1132_v27, %v760_v43 }
 0x24f   : > { %v763_v45 = vpop.xlane.xlu1 %762 }
 0x250   : > { %810 = vst.msk [vmem:[%s1585_s20 + $0x50] sm:$0xff] %vm799_vm2, %v793_v44  ;;  %v794_v46 = vadd.f32 %v1132_v27, %v763_v45 }
 0x251   : > { %v754_v47 = vpop.xlane.xlu0 %753 }
 0x252   : > { %811 = vst.msk [vmem:[%s1585_s20 + $0x58] sm:$0xff] %vm799_vm2, %v794_v46  ;;  %v791_v48 = vadd.f32 %v1132_v27, %v754_v47 }
 0x253   : > { %v757_v49 = vpop.xlane.xlu1 %756 }
 0x254   : > { %808 = vst.msk [vmem:[%s1585_s20 + $0x40] sm:$0xff] %vm799_vm2, %v791_v48  ;;  %v792_v50 = vadd.f32 %v1132_v27, %v757_v49 }
 0x255   : > { %v766_v51 = vpop.xlane.xlu0 %765 }
 0x256   : > { %809 = vst.msk [vmem:[%s1585_s20 + $0x48] sm:$0xff] %vm799_vm2, %v792_v50  ;;  %v795_v52 = vadd.f32 %v1132_v27, %v766_v51 }
 0x258   : > { %812 = vst.msk [vmem:[%s1585_s20 + $0x60] sm:$0xff] %vm799_vm2, %v795_v52 }
 0x259   : > { %v769_v53 = vpop.xlane.xlu1 %768  ;;  %v772_v54 = vpop.xlane.xlu0 %771 }
 0x25a   : > { %v796_v55 = vadd.f32 %v1132_v27, %v769_v53  ;;  %v797_v56 = vadd.f32 %v1132_v27, %v772_v54 }
 0x25c   : > { %813 = vst.msk [vmem:[%s1585_s20 + $0x68] sm:$0xff] %vm799_vm2, %v796_v55  ;;  %814 = vst.msk [vmem:[%s1585_s20 + $0x70] sm:$0xff] %vm799_vm2, %v797_v56  ;;  %822 = sbr.rel (!%p1477_p4) target bundleno = 650 (0x28a), region = 52 }
 0x25d   : > { %v775_v57 = vpop.xlane.xlu1 %774 }
 0x25e   : > { %v798_v58 = vadd.f32 %v1132_v27, %v775_v57 }
 0x260   : > { %815 = vst.msk [vmem:[%s1585_s20 + $0x78] sm:$0xff] %vm799_vm2, %v798_v58 }
 0x261   : > { %s1735_s26 = smov (!%p825_p8, %s824_s26), 16 }
 0x262   : > { %s1135_s25 = sshll.u32 %s1735_s26, 7 }
 0x263   : > { %p1138_p9 = scmp.eq.s32.totalorder %s1135_s25, 0 }
 0x264   : > { %s1632_s28 = sshrl.u32 (!%p1138_p9), %s1735_s26, 4 }
 0x265   : > { %833 = sbr.rel (%p1138_p9) target bundleno = 650 (0x28a), region = 56  ;;  %p1139_p10 = scmp.le.s32.totalorder (!%p1138_p9), %s1632_s28, 0 }
 0x26a   : > { %1048 = sbr.rel (%p1139_p10) target bundleno = 633 (0x279), region = 132  ;;  %s1728_s6 = smov (!%p1139_p10), %s1626_s24 }
 0x26b   : > { %s1729_s10 = smov (!%p1139_p10), %s1585_s20  ;;  %s1641_s13 = smov (!%p1139_p10), 0  }
 0x26c   : > { %s1643_s30 = smov (!%p1139_p10), 0  }
 0x26f LB: >> { %v926_v59 = vld [vmem:[%s1383_s10] sm:$0xff]  ;;  %v928_v60 = vld [vmem:[%s1383_s10 + $0x8] sm:$0xff]  ;;  %v930_v61 = vld [vmem:[%s1383_s10 + $0x10] sm:$0xff]  ;;  %s958_s8 = sadd.s32 1, %s1387_s13  ;;  %s920_s30 = sadd.s32 1, %s1391_s30   ;;  %s1391_s30 = sphi %s1643_s30, %s920_s30   ;;  %s1387_s13 = sphi %s1641_s13, %s1730_s13   ;;  %s1383_s10 = sphi %s1729_s10, %s963_s10   ;;  %s1379_s6 = sphi %s1728_s6, %s964_s6  }
 0x270   : >> { %927 = vst [vmem:[%s1379_s6] sm:$0xff] %v926_v59  ;;  %929 = vst [vmem:[%s1379_s6 + $0x8] sm:$0xff] %v928_v60  ;;  %v932_v62 = vld [vmem:[%s1383_s10 + $0x18] sm:$0xff]  ;;  %v934_v63 = vld [vmem:[%s1383_s10 + $0x20] sm:$0xff]  ;;  %p959_p11 = scmp.ge.s32.totalorder %s958_s8, %s1632_s28  ;;  %p919_p12 = scmp.ge.s32.totalorder %s920_s30, %s1632_s28 }
 0x271   : >> { %931 = vst [vmem:[%s1379_s6 + $0x10] sm:$0xff] %v930_v61  ;;  %v936_v0 = vld [vmem:[%s1383_s10 + $0x28] sm:$0xff]  ;;  %933 = vst [vmem:[%s1379_s6 + $0x18] sm:$0xff] %v932_v62  ;;  %v938_v1 = vld [vmem:[%s1383_s10 + $0x30] sm:$0xff] }
 0x272   : >> { %935 = vst [vmem:[%s1379_s6 + $0x20] sm:$0xff] %v934_v63  ;;  %937 = vst [vmem:[%s1379_s6 + $0x28] sm:$0xff] %v936_v0  ;;  %v940_v2 = vld [vmem:[%s1383_s10 + $0x38] sm:$0xff]  ;;  %v942_v3 = vld [vmem:[%s1383_s10 + $0x40] sm:$0xff]  ;;  %s1737_s8 = smov (%p959_p11, %s958_s8), 0 }
 0x273   : >> { %939 = vst [vmem:[%s1379_s6 + $0x30] sm:$0xff] %v938_v1  ;;  %941 = vst [vmem:[%s1379_s6 + $0x38] sm:$0xff] %v940_v2  ;;  %v944_v4 = vld [vmem:[%s1383_s10 + $0x48] sm:$0xff]  ;;  %v946_v5 = vld [vmem:[%s1383_s10 + $0x50] sm:$0xff]  ;;  %s1140_s11 = sshll.u32 %s1737_s8, 7  ;;  %s1730_s13 = smov %s1737_s8 }
 0x274   : >> { %943 = vst [vmem:[%s1379_s6 + $0x40] sm:$0xff] %v942_v3  ;;  %v948_v6 = vld [vmem:[%s1383_s10 + $0x58] sm:$0xff]  ;;  %945 = vst [vmem:[%s1379_s6 + $0x48] sm:$0xff] %v944_v4  ;;  %v950_v7 = vld [vmem:[%s1383_s10 + $0x60] sm:$0xff]  ;;  %922 = sbr.rel (!%p919_p12) target bundleno = 623 (0x26f), region = 138 }
 0x275   : >> { %947 = vst [vmem:[%s1379_s6 + $0x50] sm:$0xff] %v946_v5  ;;  %949 = vst [vmem:[%s1379_s6 + $0x58] sm:$0xff] %v948_v6  ;;  %v952_v9 = vld [vmem:[%s1383_s10 + $0x68] sm:$0xff]  ;;  %v954_v10 = vld [vmem:[%s1383_s10 + $0x70] sm:$0xff] }
 0x276   : >> { %951 = vst [vmem:[%s1379_s6 + $0x60] sm:$0xff] %v950_v7  ;;  %953 = vst [vmem:[%s1379_s6 + $0x68] sm:$0xff] %v952_v9  ;;  %v956_v11 = vld [vmem:[%s1383_s10 + $0x78] sm:$0xff]  ;;  %s963_s10 = scalar_lea.vmem %s1585_s20, %s1140_s11 [#allocation3]  }
 0x277   : >> { %955 = vst [vmem:[%s1379_s6 + $0x70] sm:$0xff] %v954_v10  ;;  %957 = vst [vmem:[%s1379_s6 + $0x78] sm:$0xff] %v956_v11  ;;  %s964_s6 = scalar_lea.vmem %s1626_s24, %s1140_s11  }
 0x279 PF: > { %s1701_s12 = sand.u32 15, %s1735_s26   ;;  %s1151_s14 = sshll.u32 %s1632_s28, 7 }
 0x27a   : > { %s969_s15 = scalar_lea.vmem %s1585_s20, %s1151_s14 [#allocation3]   ;;  %s971_s16 = scalar_lea.vmem %s1626_s24, %s1151_s14  }
 0x27b   : > { %p1145_p13 = scmp.le.s32.totalorder %s1701_s12, 0 }
 0x27c   : > { %s1393_s17 = smov (!%p1145_p13), %s971_s16   ;;  %s1397_s18 = smov (!%p1145_p13), %s969_s15  }
 0x27d   : > { %1062 = sbr.rel (%p1145_p13) target bundleno = 650 (0x28a), region = 143  ;;  %s1401_s19 = smov (!%p1145_p13), 0  }
 0x27e   : > { %s1405_s21 = smov (!%p1145_p13), 0  }
 0x282 LB: >> { %v981_v13 = vld [vmem:[%s1399_s18] sm:$0xff]  ;;  %s983_s26 = sadd.s32 1, %s1403_s19  ;;  %s975_s21 = sadd.s32 1, %s1407_s21   ;;  %s1407_s21 = sphi %s1405_s21, %s975_s21   ;;  %s1403_s19 = sphi %s1401_s19, %s1402_s19   ;;  %s1399_s18 = sphi %s1397_s18, %s988_s18   ;;  %s1395_s17 = sphi %s1393_s17, %s989_s17  }
 0x283   : >> { %982 = vst [vmem:[%s1395_s17] sm:$0xff] %v981_v13  ;;  %p984_p0 = scmp.ge.s32.totalorder %s983_s26, %s1701_s12  ;;  %p974_p1 = scmp.ge.s32.totalorder %s975_s21, %s1701_s12 }
 0x285   : >> { %s1739_s26 = smov (%p984_p0, %s983_s26), 0  ;;  %977 = sbr.rel (!%p974_p1) target bundleno = 642 (0x282), region = 149 }
 0x286   : >> { %s1146_s20 = sshll.u32 %s1739_s26, 3  ;;  %s1402_s19 = smov %s1739_s26  }
 0x287   : >> { %s988_s18 = scalar_lea.vmem %s969_s15, %s1146_s20 [#allocation3]   ;;  %s989_s17 = scalar_lea.vmem %s971_s16, %s1146_s20  }
 0x28a PF: > { %p16_p2 = scmp.ge.s32.totalorder %s1467_s29, 5   ;;  %s1731_s26 = smov %s1371_s27 }
 0x28b   : > { %s1732_s27 = smov %s1475_s9  ;;  %s1733_s28 = smov %s1467_s29 }
 0x28c   :  { %18 = sbr.rel (!%p16_p2) target bundleno = 5 (0x5), region = 160 }

</bundles_post_ra>
